<compile_context>
chip_gen: v7x
topology: tpu7x:2x2x1
jax: 0.10.0
libtpu: 0.0.40
codegen_flags: <defaults>
</compile_context>

<pallas_src>
import jax
import jax.numpy as jnp
from jax.experimental import pallas as pl
from jax.experimental.pallas import tpu as pltpu

_LANE = 128
_NEG_LARGE = -1e30  # folded into b3's padded lanes; exp(x - max) underflows to 0


def _round_up(x, m):
    return ((x + m - 1) // m) * m


def _actor_kernel(x_ref, w1_ref, b1_ref, w2_ref, b2_ref, w3_ref, b3_ref, p_ref):
    """Fused MLP (Linear->ReLU->Linear->ReLU->Linear) + softmax over 128 lanes.

    The action-lane mask is pre-folded into b3 (padded lanes hold -1e30), so
    padded logits are exactly -1e30 and exp(logit - max) underflows to exactly
    0 for them -- no iota/compare/select needed in the epilogue.
    """
    x = x_ref[...]

    # Layer 1: (TB, S) @ (S, 128) + (1, 128) -> ReLU
    h1 = jnp.dot(x, w1_ref[...], preferred_element_type=jnp.float32)
    h1 = jnp.maximum(h1 + b1_ref[...], 0.0)

    # Layer 2: (TB, 128) @ (128, 128) + (1, 128) -> ReLU
    h2 = jnp.dot(h1, w2_ref[...], preferred_element_type=jnp.float32)
    h2 = jnp.maximum(h2 + b2_ref[...], 0.0)

    # Layer 3 (logits): (TB, 128) @ (128, 128) + (1, 128)
    logits = jnp.dot(h2, w3_ref[...], preferred_element_type=jnp.float32)
    logits = logits + b3_ref[...]

    # Softmax along lanes (padded lanes carry -1e30 from b3 -> contribute 0).
    m = jnp.max(logits, axis=-1, keepdims=True)
    e = jnp.exp(logits - m)
    denom = jnp.sum(e, axis=-1, keepdims=True)
    # Divide on the EUP slot; one Newton step restores ~f32 accuracy.
    inv = pl.reciprocal(denom, approx=True)
    inv = inv * (2.0 - denom * inv)
    p_ref[...] = (e * inv).astype(p_ref.dtype)


def actor_forward_padded(state, padded_params, *, tile_b=4096, core_parallel=False):
    """Run the fused Actor forward.

    Returns LANE-PADDED action probabilities of shape (B, A_pad); the padded
    action lanes are exactly 0.  Hot-path consumers should read this padded
    array directly (fusing any narrow slice) to avoid an extra HBM pass.
    """
    w1, b1 = padded_params["w1"], padded_params["b1"]
    w2, b2 = padded_params["w2"], padded_params["b2"]
    w3, b3 = padded_params["w3"], padded_params["b3"]

    B, S = state.shape
    A_pad = w3.shape[1]

    # Per-grid-step overhead dominates for this tiny MLP, so cover the whole
    # batch with one block whenever it fits; that also removes row padding and
    # the post-kernel row slice.  Otherwise use large, 8-aligned tiles.
    if B <= tile_b:
        tile_b = B                      # full-array block: no sublane constraint
        B_pad = B
    else:
        tile_b = _round_up(tile_b, 8)   # sublane-aligned multi-tile path
        B_pad = _round_up(B, tile_b)
    grid = (B_pad // tile_b,)
    if B_pad != B:                      # only reachable on the multi-tile path
        state = jnp.pad(state, ((0, B_pad - B), (0, 0)))

    if core_parallel:
        # TODO(synk): on v7x set core_parallel=True if the profile shows the
        # batch axis running on a single TensorCore under plain "parallel".
        dim_sem = (pltpu.CORE_PARALLEL,)
    else:
        dim_sem = ("parallel",)

    # Constant index_maps keep weights resident in VMEM across grid steps (no
    # re-DMA).  pl.Buffered(1) would only shave ~132 KiB of VMEM, so it is
    # intentionally omitted to keep lowering maximally portable.
    resident = lambda a: pl.BlockSpec(a.shape, lambda i: (0, 0))

    probs = pl.pallas_call(
        _actor_kernel,
        out_shape=jax.ShapeDtypeStruct((B_pad, A_pad), jnp.float32),
        grid=grid,
        in_specs=[
            pl.BlockSpec((tile_b, S), lambda i: (i, 0)),   # streamed state tile
            resident(w1), resident(b1),                    # weights resident
            resident(w2), resident(b2),
            resident(w3), resident(b3),
        ],
        out_specs=pl.BlockSpec((tile_b, A_pad), lambda i: (i, 0)),
        compiler_params=pltpu.CompilerParams(dimension_semantics=dim_sem),
    )(state, w1, b1, w2, b2, w3, b3)

    return probs if B_pad == B else probs[:B]


def actor_forward(state, padded_params, action_size, **kwargs):
    """Convenience wrapper returning (B, action_size) probabilities.

    NOTE: the narrow lane-slice is an extra XLA pass over the output; prefer
    actor_forward_padded (+ fusing the slice into the consumer) on hot paths.
    """
    return actor_forward_padded(state, padded_params, **kwargs)[:, :action_size]


def init_actor_params(key, state_size, action_size, hidden_sizes=(64, 64)):
    """PyTorch nn.Linear default init: uniform(-1/sqrt(fan_in), 1/sqrt(fan_in))
    for both weight and bias.  Weights stored as (in_features, out_features)."""
    sizes = [state_size] + list(hidden_sizes) + [action_size]
    params = {}
    for j in range(len(sizes) - 1):
        fan_in, fan_out = sizes[j], sizes[j + 1]
        key, kw, kb = jax.random.split(key, 3)
        lim = 1.0 / jnp.sqrt(jnp.float32(fan_in))
        params[f"w{j+1}"] = jax.random.uniform(
            kw, (fan_in, fan_out), jnp.float32, -lim, lim)
        params[f"b{j+1}"] = jax.random.uniform(
            kb, (1, fan_out), jnp.float32, -lim, lim)
    return params


def pad_actor_params(params, lane=_LANE):
    """Pad hidden/output feature dims to `lane` once, up front.

    Hidden pads are zero (exact: ReLU(0)=0, zero rows/cols contribute nothing).
    The final bias b3 is padded with -1e30 so the padded action lanes are
    masked out of the softmax with zero extra per-element work in the kernel.
    """
    def pad0(a, rows, cols):
        r, c = a.shape
        return jnp.pad(a, ((0, rows - r), (0, cols - c)))

    S, H1 = params["w1"].shape
    H2 = params["w2"].shape[1]
    A = params["w3"].shape[1]
    H1p, H2p, Ap = _round_up(H1, lane), _round_up(H2, lane), _round_up(A, lane)
    return {
        "w1": pad0(params["w1"], S, H1p),
        "b1": pad0(params["b1"], 1, H1p),
        "w2": pad0(params["w2"], H1p, H2p),
        "b2": pad0(params["b2"], 1, H2p),
        "w3": pad0(params["w3"], H2p, Ap),
        "b3": jnp.pad(params["b3"], ((0, 0), (0, Ap - A)),
                      constant_values=_NEG_LARGE),
    }


def actor_reference(state, params):
    """Plain-JAX reference for correctness checks (unpadded params)."""
    h = jnp.maximum(state @ params["w1"] + params["b1"], 0.0)
    h = jnp.maximum(h @ params["w2"] + params["b2"], 0.0)
    logits = h @ params["w3"] + params["b3"]
    return jax.nn.softmax(logits, axis=-1)


if __name__ == "__main__":
    key = jax.random.PRNGKey(0)
    k_params, k_state, k_state2 = jax.random.split(key, 3)

    batch = 8
    state_size = 16
    action_size = 8
    hidden_sizes = (64, 64)

    params = init_actor_params(k_params, state_size, action_size, hidden_sizes)
    padded = pad_actor_params(params)   # pad once, not per call

    # Tolerance note: the EUP approx reciprocal + one Newton step is accurate
    # to ~1e-7 relative; 1e-4 gives generous margin across TPU generations.
    TOL = dict(atol=1e-4, rtol=1e-4)

    # --- Small-batch check (single-block fast path, no pad, no row slice). ---
    state = jax.random.normal(k_state, (batch, state_size), jnp.float32)
    probs_pad = jax.block_until_ready(actor_forward_padded(state, padded))
    probs = jax.block_until_ready(actor_forward(state, padded, action_size))
    probs_ref = actor_reference(state, params)
    assert probs.shape == (batch, action_size)
    assert probs_pad.shape == (batch, _LANE)
    assert bool(jnp.all(probs_pad[:, action_size:] == 0.0)), "padded lanes not zero"
    assert jnp.allclose(probs, probs_ref, **TOL), "mismatch vs reference"
    assert jnp.allclose(probs.sum(-1), 1.0, **TOL), "probs do not sum to 1"

    # --- Larger, non-multiple batch: still the single-block fast path. ---
    state2 = jax.random.normal(k_state2, (300, state_size), jnp.float32)
    probs2 = jax.block_until_ready(actor_forward(state2, padded, action_size))
    probs2_ref = actor_reference(state2, params)
    assert probs2.shape == (300, action_size)
    assert jnp.allclose(probs2, probs2_ref, **TOL), "mismatch (single big block)"

    # --- Force the multi-tile path (tile_b < B) to exercise padding/slicing. ---
    probs3 = jax.block_until_ready(
        actor_forward(state2, padded, action_size, tile_b=128))
    assert probs3.shape == (300, action_size)
    assert jnp.allclose(probs3, probs2_ref, **TOL), "mismatch (multi-tile path)"

    print("KERNEL_OK")
</pallas_src>

<mosaic_0001>
module attributes {stable_mosaic.version = 11 : i64} {
  func.func @_actor_kernel(%arg0: i32, %arg1: memref<8x16xf32, #tpu.memory_space<vmem>>, %arg2: memref<16x128xf32, #tpu.memory_space<vmem>>, %arg3: memref<1x128xf32, #tpu.memory_space<vmem>>, %arg4: memref<128x128xf32, #tpu.memory_space<vmem>>, %arg5: memref<1x128xf32, #tpu.memory_space<vmem>>, %arg6: memref<128x128xf32, #tpu.memory_space<vmem>>, %arg7: memref<1x128xf32, #tpu.memory_space<vmem>>, %arg8: memref<8x128xf32, #tpu.memory_space<vmem>>) attributes {dimension_semantics = [#tpu.dimension_semantics<parallel>], iteration_bounds = array<i64: 1>, scalar_prefetch = 0 : i64, scratch_operands = 0 : i64, tpu.core_type = #tpu.core_type<tc>, window_params = [{transform_indices = @transform_0, window_bounds = array<i64: 8, 16>}, {pipeline_mode = #tpu.pipeline_mode<synchronous>, transform_indices = @transform_1, window_bounds = array<i64: 16, 128>}, {pipeline_mode = #tpu.pipeline_mode<synchronous>, transform_indices = @transform_2, window_bounds = array<i64: 1, 128>}, {pipeline_mode = #tpu.pipeline_mode<synchronous>, transform_indices = @transform_3, window_bounds = array<i64: 128, 128>}, {pipeline_mode = #tpu.pipeline_mode<synchronous>, transform_indices = @transform_4, window_bounds = array<i64: 1, 128>}, {pipeline_mode = #tpu.pipeline_mode<synchronous>, transform_indices = @transform_5, window_bounds = array<i64: 128, 128>}, {pipeline_mode = #tpu.pipeline_mode<synchronous>, transform_indices = @transform_6, window_bounds = array<i64: 1, 128>}, {transform_indices = @transform_7, window_bounds = array<i64: 8, 128>}]} {
    %c0 = arith.constant 0 : index
    %c0_0 = arith.constant 0 : index
    %0 = vector.load %arg1[%c0, %c0_0] : memref<8x16xf32, #tpu.memory_space<vmem>>, vector<8x16xf32>
    %c0_1 = arith.constant 0 : index
    %c0_2 = arith.constant 0 : index
    %1 = vector.load %arg2[%c0_1, %c0_2] : memref<16x128xf32, #tpu.memory_space<vmem>>, vector<16x128xf32>
    %cst = arith.constant dense<0.000000e+00> : vector<8x128xf32>
    %2 = tpu.matmul %0, %1, %cst {dimension_numbers = #tpu.dot_dimension_numbers<[1], [0], [0], [1], [0, 0, 1, 1], [], []>} : vector<8x16xf32>, vector<16x128xf32>, vector<8x128xf32> -> vector<8x128xf32>
    %c0_3 = arith.constant 0 : index
    %c0_4 = arith.constant 0 : index
    %3 = vector.load %arg3[%c0_3, %c0_4] : memref<1x128xf32, #tpu.memory_space<vmem>>, vector<1x128xf32>
    %4 = vector.broadcast %3 : vector<1x128xf32> to vector<8x128xf32>
    %5 = arith.addf %2, %4 : vector<8x128xf32>
    %cst_5 = arith.constant 0.000000e+00 : f32
    %6 = vector.broadcast %cst_5 : f32 to vector<8x128xf32>
    %7 = arith.maximumf %5, %6 : vector<8x128xf32>
    %c0_6 = arith.constant 0 : index
    %c0_7 = arith.constant 0 : index
    %8 = vector.load %arg4[%c0_6, %c0_7] : memref<128x128xf32, #tpu.memory_space<vmem>>, vector<128x128xf32>
    %cst_8 = arith.constant dense<0.000000e+00> : vector<8x128xf32>
    %9 = tpu.matmul %7, %8, %cst_8 {dimension_numbers = #tpu.dot_dimension_numbers<[1], [0], [0], [1], [0, 0, 1, 1], [], []>} : vector<8x128xf32>, vector<128x128xf32>, vector<8x128xf32> -> vector<8x128xf32>
    %c0_9 = arith.constant 0 : index
    %c0_10 = arith.constant 0 : index
    %10 = vector.load %arg5[%c0_9, %c0_10] : memref<1x128xf32, #tpu.memory_space<vmem>>, vector<1x128xf32>
    %11 = vector.broadcast %10 : vector<1x128xf32> to vector<8x128xf32>
    %12 = arith.addf %9, %11 : vector<8x128xf32>
    %cst_11 = arith.constant 0.000000e+00 : f32
    %13 = vector.broadcast %cst_11 : f32 to vector<8x128xf32>
    %14 = arith.maximumf %12, %13 : vector<8x128xf32>
    %c0_12 = arith.constant 0 : index
    %c0_13 = arith.constant 0 : index
    %15 = vector.load %arg6[%c0_12, %c0_13] : memref<128x128xf32, #tpu.memory_space<vmem>>, vector<128x128xf32>
    %cst_14 = arith.constant dense<0.000000e+00> : vector<8x128xf32>
    %16 = tpu.matmul %14, %15, %cst_14 {dimension_numbers = #tpu.dot_dimension_numbers<[1], [0], [0], [1], [0, 0, 1, 1], [], []>} : vector<8x128xf32>, vector<128x128xf32>, vector<8x128xf32> -> vector<8x128xf32>
    %c0_15 = arith.constant 0 : index
    %c0_16 = arith.constant 0 : index
    %17 = vector.load %arg7[%c0_15, %c0_16] : memref<1x128xf32, #tpu.memory_space<vmem>>, vector<1x128xf32>
    %18 = vector.broadcast %17 : vector<1x128xf32> to vector<8x128xf32>
    %19 = arith.addf %16, %18 : vector<8x128xf32>
    %cst_17 = arith.constant dense<0xFF800000> : vector<8xf32>
    %20 = vector.multi_reduction <maximumf>, %19, %cst_17 [1] : vector<8x128xf32> to vector<8xf32>
    %21 = vector.shape_cast %20 : vector<8xf32> to vector<8x1xf32>
    %22 = vector.broadcast %21 : vector<8x1xf32> to vector<8x128xf32>
    %23 = arith.subf %19, %22 : vector<8x128xf32>
    %24 = math.exp %23 : vector<8x128xf32>
    %cst_18 = arith.constant dense<0.000000e+00> : vector<8xf32>
    %25 = vector.multi_reduction <add>, %24, %cst_18 [1] : vector<8x128xf32> to vector<8xf32>
    %26 = vector.shape_cast %25 : vector<8xf32> to vector<8x1xf32>
    %27 = tpu.reciprocal %26 {approx = true} : vector<8x1xf32> -> vector<8x1xf32>
    %28 = arith.mulf %26, %27 : vector<8x1xf32>
    %cst_19 = arith.constant 2.000000e+00 : f32
    %29 = vector.broadcast %cst_19 : f32 to vector<8x1xf32>
    %30 = arith.subf %29, %28 : vector<8x1xf32>
    %31 = arith.mulf %27, %30 : vector<8x1xf32>
    %32 = vector.broadcast %31 : vector<8x1xf32> to vector<8x128xf32>
    %33 = arith.mulf %24, %32 : vector<8x128xf32>
    %c0_20 = arith.constant 0 : index
    %c0_21 = arith.constant 0 : index
    %34 = vector.load %arg8[%c0_20, %c0_21] : memref<8x128xf32, #tpu.memory_space<vmem>>, vector<8x128xf32>
    tpu.vector_store %arg8[%c0_20, %c0_21], %33 {strides = array<i32>} : memref<8x128xf32, #tpu.memory_space<vmem>>, vector<8x128xf32>,
    return
  }
  func.func @transform_0(%arg0: i32) -> (i32, i32) {
    %c0_i32 = arith.constant 0 : i32
    %c0_i32_0 = arith.constant 0 : i32
    return %arg0, %c0_i32 : i32, i32
  }
  func.func @transform_1(%arg0: i32) -> (i32, i32) {
    %c0_i32 = arith.constant 0 : i32
    %c0_i32_0 = arith.constant 0 : i32
    %c0_i32_1 = arith.constant 0 : i32
    return %c0_i32, %c0_i32_0 : i32, i32
  }
  func.func @transform_2(%arg0: i32) -> (i32, i32) {
    %c0_i32 = arith.constant 0 : i32
    %c0_i32_0 = arith.constant 0 : i32
    %c0_i32_1 = arith.constant 0 : i32
    return %c0_i32, %c0_i32_0 : i32, i32
  }
  func.func @transform_3(%arg0: i32) -> (i32, i32) {
    %c0_i32 = arith.constant 0 : i32
    %c0_i32_0 = arith.constant 0 : i32
    %c0_i32_1 = arith.constant 0 : i32
    return %c0_i32, %c0_i32_0 : i32, i32
  }
  func.func @transform_4(%arg0: i32) -> (i32, i32) {
    %c0_i32 = arith.constant 0 : i32
    %c0_i32_0 = arith.constant 0 : i32
    %c0_i32_1 = arith.constant 0 : i32
    return %c0_i32, %c0_i32_0 : i32, i32
  }
  func.func @transform_5(%arg0: i32) -> (i32, i32) {
    %c0_i32 = arith.constant 0 : i32
    %c0_i32_0 = arith.constant 0 : i32
    %c0_i32_1 = arith.constant 0 : i32
    return %c0_i32, %c0_i32_0 : i32, i32
  }
  func.func @transform_6(%arg0: i32) -> (i32, i32) {
    %c0_i32 = arith.constant 0 : i32
    %c0_i32_0 = arith.constant 0 : i32
    %c0_i32_1 = arith.constant 0 : i32
    return %c0_i32, %c0_i32_0 : i32, i32
  }
  func.func @transform_7(%arg0: i32) -> (i32, i32) {
    %c0_i32 = arith.constant 0 : i32
    %c0_i32_0 = arith.constant 0 : i32
    return %arg0, %c0_i32 : i32, i32
  }
}

</mosaic_0001>

<bundles_post_ra>
// kernel: tpu_custom_call.1
= control target key start
LH: loop header
LB: loop body
LE: loop exit
PB: predicated region body
PF: predicated region fallthrough
CT: control target
= control target key end

     0   :  { %12 = vsyncpa [#allocation3], 0  ;;  %s831_s0 = inlined_call_operand.hbm [shape: f32[8,16], index: 0, kind: input, shape index: {}]   ;;  %s832_s1 = inlined_call_operand.hbm [shape: f32[16,128], index: 1, kind: input, shape index: {}]   ;;  %s833_s2 = inlined_call_operand.vmem [shape: f32[1,128], index: 2, kind: input, shape index: {}]   ;;  %s834_s3 = inlined_call_operand.hbm [shape: f32[128,128], index: 3, kind: input, shape index: {}]   ;;  %s835_s4 = inlined_call_operand.vmem [shape: f32[1,128], index: 4, kind: input, shape index: {}]   ;;  %s836_s5 = inlined_call_operand.hbm [shape: f32[128,128], index: 5, kind: input, shape index: {}]   ;;  %s837_s6 = inlined_call_operand.vmem [shape: f32[1,128], index: 6, kind: input, shape index: {}]   ;;  %s838_s7 = inlined_call_operand.hbm [shape: f32[8,128], index: 7, kind: output, shape index: {}]  }
   0x1   :  { %13 = vsyncpa [#allocation6], 0 }
   0x2   :  { %14 = vsyncpa [#allocation9], 0 }
   0x3   :  { %15 = vsyncpa [#allocation4], 0  ;;  %s683_s24 = smov [#allocation5]   ;;  %s565_s28 = scalar_lea.hbm %s832_s1, 256 }
   0x4   :  { %s31_s25 = sshll.u32 %s683_s24, 4  ;;  %p566_p0 = scmp.ne.s32.totalorder %s832_s1, %s565_s28  ;;  %s32_s25 = int_to_ptr.vmem [resolvable:$true] %s31_s25 }
   0x5   :  { %p569_p1 = scmp.lt.u32.totalorder %s565_s28, %s832_s1 }
   0x7   :  { %p571_p2 = pnand %p569_p1, %p566_p0 }
   0x9   :  { %574 = shalt.err (!%p571_p2)
}
   0xa   :  { %s575_s10 = scalar_lea.vmem %s32_s25, 256  ;;  %p580_p4 = scmp.lt.s32.totalorder %s32_s25, %s32_s25 }
   0xb   :  { %p576_p3 = scmp.ne.s32.totalorder %s32_s25, %s575_s10  ;;  %p581_p5 = scmp.lt.s32.totalorder %s575_s10, %s575_s10 }
   0xd   :  { %p582_p6 = por %p581_p5, %p580_p4 }
   0xf   :  { %p583_p7 = pnand %p582_p6, %p576_p3 }
  0x11   :  { %586 = shalt.err (!%p583_p7)
}
  0x12   :  { %s684_s11 = smov 128   ;;  %s685_s12 = smov 8  }
  0x13   :  { %37 = dma.hbm_to_vmem [thread:$0]  %s832_s1, 256, %s32_s25, [#allocation6], %s684_s11, %s684_s11, %s685_s12  }
  0x14   :  { %s686_s15 = smov [#allocation2]   ;;  %s687_s17 = smov [#allocation7]  }
  0x15   :  { %s22_s16 = sshll.u32 %s686_s15, 4  ;;  %s45_s18 = sshll.u32 %s687_s17, 4  ;;  %s23_s16 = int_to_ptr.vmem [resolvable:$true] %s22_s16  ;;  %s46_s18 = int_to_ptr.vmem [resolvable:$true] %s45_s18 }
  0x16   :  { %s587_s21 = scalar_lea.hbm %s831_s0, 128 }
  0x17   :  { %p588_p8 = scmp.ne.s32.totalorder %s831_s0, %s587_s21  ;;  %p591_p9 = scmp.lt.u32.totalorder %s587_s21, %s831_s0 }
  0x19   :  { %p593_p10 = pnand %p591_p9, %p588_p8 }
  0x1b   :  { %596 = shalt.err (!%p593_p10)
}
  0x1c   :  { %s597_s1 = scalar_lea.vmem %s23_s16, 128  ;;  %p602_p12 = scmp.lt.s32.totalorder %s23_s16, %s23_s16 }
  0x1d   :  { %p598_p11 = scmp.ne.s32.totalorder %s23_s16, %s597_s1  ;;  %p603_p13 = scmp.lt.s32.totalorder %s597_s1, %s597_s1 }
  0x1f   :  { %p604_p0 = por %p603_p13, %p602_p12 }
  0x21   :  { %p605_p1 = pnand %p604_p0, %p598_p11 }
  0x23   :  { %608 = shalt.err (!%p605_p1)
}
  0x24   :  { %25 = dma.hbm_to_vmem [thread:$0]  %s831_s0, 128, %s23_s16, [#allocation3]  }
  0x25   :  { %s609_s30 = scalar_lea.hbm %s834_s3, 2048 }
  0x26   :  { %p610_p2 = scmp.ne.s32.totalorder %s834_s3, %s609_s30  ;;  %p613_p3 = scmp.lt.u32.totalorder %s609_s30, %s834_s3 }
  0x28   :  { %p615_p4 = pnand %p613_p3, %p610_p2 }
  0x2a   :  { %618 = shalt.err (!%p615_p4)
}
  0x2b   :  { %s619_s14 = scalar_lea.vmem %s46_s18, 2048  ;;  %p624_p6 = scmp.lt.s32.totalorder %s46_s18, %s46_s18 }
  0x2c   :  { %p620_p5 = scmp.ne.s32.totalorder %s46_s18, %s619_s14  ;;  %p625_p7 = scmp.lt.s32.totalorder %s619_s14, %s619_s14 }
  0x2e   :  { %p626_p8 = por %p625_p7, %p624_p6 }
  0x30   :  { %p627_p9 = pnand %p626_p8, %p620_p5 }
  0x32   :  { %630 = shalt.err (!%p627_p9)
}
  0x33   :  { %51 = dma.hbm_to_vmem [thread:$0]  %s834_s3, 2048, %s46_s18, [#allocation6], %s684_s11, %s684_s11, %s685_s12  }
  0x34   :  { %s688_s16 = smov [#allocation8]   ;;  %s631_s21 = scalar_lea.hbm %s836_s5, 2048 }
  0x35   :  { %s59_s17 = sshll.u32 %s688_s16, 4  ;;  %p632_p10 = scmp.ne.s32.totalorder %s836_s5, %s631_s21  ;;  %s60_s17 = int_to_ptr.vmem [resolvable:$true] %s59_s17 }
  0x36   :  { %p635_p11 = scmp.lt.u32.totalorder %s631_s21, %s836_s5 }
  0x38   :  { %p637_p12 = pnand %p635_p11, %p632_p10 }
  0x3a   :  { %640 = shalt.err (!%p637_p12)
}
  0x3b   :  { %s641_s1 = scalar_lea.vmem %s60_s17, 2048  ;;  %p646_p0 = scmp.lt.s32.totalorder %s60_s17, %s60_s17 }
  0x3c   :  { %p642_p13 = scmp.ne.s32.totalorder %s60_s17, %s641_s1  ;;  %p647_p1 = scmp.lt.s32.totalorder %s641_s1, %s641_s1 }
  0x3e   :  { %p648_p2 = por %p647_p1, %p646_p0 }
  0x40   :  { %p649_p3 = pnand %p648_p2, %p642_p13 }
  0x42   :  { %652 = shalt.err (!%p649_p3)
}
  0x43   :  { %65 = dma.hbm_to_vmem [thread:$0]  %s836_s5, 2048, %s60_s17, [#allocation9], %s684_s11, %s684_s11, %s685_s12  }
  0x44   :  { %675 = dma.done.wait [#allocation3], 128  }
  0x45   :  { %676 = vsyncadd [#allocation3], 4294967168 }
  0x46   :  { %677 = dma.done.wait [#allocation6], 2304  }
  0x47   :  { %678 = vsyncadd [#allocation6], 4294964992 }
  0x48   :  { %679 = dma.done.wait [#allocation9], 2048  }
  0x49   :  { %680 = vsyncadd [#allocation9], 4294965248  ;;  %v689_v0 = vmov 0.0|0.0   ;;  %vm690_vm0 = vmmov 0   ;;  %v691_v1 = vmov 0.0   ;;  %v81_v2 = vld [vmem:[#allocation5] sm:$0xff] }
  0x4a   :  { %500 = vmatprep.subr.bf16.mxu0 %v689_v0  ;;  %427 = vmatprep.mubr.msk.f32.mxu0 %vm690_vm0, %v691_v1  ;;  %v82_v3 = vld [vmem:[#allocation5 + $0x8] sm:$0xff]  ;;  %v165_v5 = vld [vmem:[#allocation7] sm:$0xff]  ;;  %v166_v6 = vld [vmem:[#allocation7 + $0x8] sm:$0xff]  ;;  %vm90_vm1 = vcmask 130048  }
  0x4b   :  { %503 = vmatprep.subr.bf16.mxu1 %v689_v0  ;;  %462 = vmatprep.mubr.msk.f32.mxu1 %vm690_vm0, %v691_v1  ;;  %v501_v4 = vpack.c.bf16 %v82_v3, %v81_v2  ;;  %v167_v7 = vld [vmem:[#allocation7 + $0x10] sm:$0xff]  ;;  %v504_v8 = vpack.c.bf16 %v166_v6, %v165_v5  ;;  %v168_v9 = vld [vmem:[#allocation7 + $0x18] sm:$0xff]  ;;  %v80_v10 = vld [vmem:[#allocation2] sm:$0xff] }
  0x4c   :  { %v507_v11 = vpack.c.bf16 %v168_v9, %v167_v7  ;;  %v169_v12 = vld [vmem:[#allocation7 + $0x20] sm:$0xff]  ;;  %v170_v13 = vld [vmem:[#allocation7 + $0x28] sm:$0xff]  ;;  %v171_v15 = vld [vmem:[#allocation7 + $0x30] sm:$0xff] }
  0x4d   :  { %502 = vmatpush3.bf16.msra.mxu0 %v501_v4  ;;  %505 = vmatpush3.bf16.msra.mxu1 %v504_v8  ;;  %v510_v14 = vpack.c.bf16 %v170_v13, %v169_v12  ;;  %v172_v16 = vld [vmem:[#allocation7 + $0x38] sm:$0xff]  ;;  %v173_v18 = vld [vmem:[#allocation7 + $0x40] sm:$0xff]  ;;  %v174_v19 = vld [vmem:[#allocation7 + $0x48] sm:$0xff] }
  0x4e   :  { %527 = vmatprep.subr.bf16.mxu0 %v689_v0  ;;  %506 = vmatprep.subr.bf16.mxu1 %v689_v0  ;;  %v513_v17 = vpack.c.bf16 %v172_v16, %v171_v15  ;;  %v516_v20 = vpack.c.bf16 %v174_v19, %v173_v18  ;;  %v175_v21 = vld [vmem:[#allocation7 + $0x50] sm:$0xff]  ;;  %v176_v22 = vld [vmem:[#allocation7 + $0x58] sm:$0xff]  ;;  %v177_v24 = vld [vmem:[#allocation7 + $0x60] sm:$0xff] }
  0x4f   :  { %v519_v23 = vpack.c.bf16 %v176_v22, %v175_v21  ;;  %v178_v25 = vld [vmem:[#allocation7 + $0x68] sm:$0xff]  ;;  %v179_v27 = vld [vmem:[#allocation7 + $0x70] sm:$0xff]  ;;  %v180_v28 = vld [vmem:[#allocation7 + $0x78] sm:$0xff] }
  0x50   :  { %428 = vmatmul.mubr.msk.f32.vlgmr.msra.gmra.mrb[0].mxu0 %vm90_vm1, %v80_v10  ;;  %v522_v26 = vpack.c.bf16 %v178_v25, %v177_v24  ;;  %v525_v29 = vpack.c.bf16 %v180_v28, %v179_v27  ;;  %v259_v30 = vld [vmem:[#allocation8] sm:$0xff]  ;;  %v260_v31 = vld [vmem:[#allocation8 + $0x8] sm:$0xff]  ;;  %v261_v32 = vld [vmem:[#allocation8 + $0x10] sm:$0xff] }
  0x51   :  { %497 = vmatprep.mubr.msk.f32.mxu0 %vm690_vm0, %v691_v1  ;;  %508 = vmatpush3.bf16.msra.mxu1 %v507_v11  ;;  %v528_v33 = vpack.c.bf16 %v260_v31, %v259_v30  ;;  %v262_v34 = vld [vmem:[#allocation8 + $0x18] sm:$0xff]  ;;  %v263_v36 = vld [vmem:[#allocation8 + $0x20] sm:$0xff]  ;;  %v264_v37 = vld [vmem:[#allocation8 + $0x28] sm:$0xff] }
  0x52   :  { %509 = vmatprep.subr.bf16.mxu1 %v689_v0  ;;  %v531_v35 = vpack.c.bf16 %v262_v34, %v261_v32  ;;  %v534_v38 = vpack.c.bf16 %v264_v37, %v263_v36  ;;  %v265_v39 = vld [vmem:[#allocation8 + $0x30] sm:$0xff]  ;;  %v266_v40 = vld [vmem:[#allocation8 + $0x38] sm:$0xff]  ;;  %v267_v42 = vld [vmem:[#allocation8 + $0x40] sm:$0xff] }
  0x53   :  { %529 = vmatpush3.bf16.msra.mxu0 %v528_v33  ;;  %v537_v41 = vpack.c.bf16 %v266_v40, %v265_v39  ;;  %v268_v43 = vld [vmem:[#allocation8 + $0x48] sm:$0xff]  ;;  %v269_v45 = vld [vmem:[#allocation8 + $0x50] sm:$0xff]  ;;  %v270_v46 = vld [vmem:[#allocation8 + $0x58] sm:$0xff] }
  0x54   :  { %530 = vmatprep.subr.bf16.mxu0 %v689_v0  ;;  %v540_v44 = vpack.c.bf16 %v268_v43, %v267_v42  ;;  %v543_v47 = vpack.c.bf16 %v270_v46, %v269_v45  ;;  %v271_v48 = vld [vmem:[#allocation8 + $0x60] sm:$0xff]  ;;  %v272_v49 = vld [vmem:[#allocation8 + $0x68] sm:$0xff]  ;;  %v273_v56 = vld [vmem:[#allocation8 + $0x70] sm:$0xff] }
  0x55   :  { %511 = vmatpush3.bf16.msra.mxu1 %v510_v14  ;;  %v546_v50 = vpack.c.bf16 %v272_v49, %v271_v48  ;;  %v382_v51 = vld [vmem:[%s833_s2] ss:$0 sm:$0xff]  ;;  %v274_v57 = vld [vmem:[#allocation8 + $0x78] sm:$0xff] }
  0x56   :  { %512 = vmatprep.subr.bf16.mxu1 %v689_v0  ;;  %v549_v58 = vpack.c.bf16 %v274_v57, %v273_v56  ;;  %v384_v59 = vld [vmem:[%s835_s4] ss:$0 sm:$0xff]  ;;  %s692_s4 = smov [#allocation10]  }
  0x57   :  { %532 = vmatpush3.bf16.msra.mxu0 %v531_v35  ;;  %s371_s28 = sshll.u32 %s692_s4, 4  ;;  %s372_s28 = int_to_ptr.vmem [resolvable:$true] %s371_s28 }
  0x58   :  { %533 = vmatprep.subr.bf16.mxu0 %v689_v0  ;;  %p658_p5 = scmp.lt.s32.totalorder %s372_s28, %s372_s28 }
  0x59   :  { %514 = vmatpush3.bf16.msra.mxu1 %v513_v17 }
  0x5a   :  { %515 = vmatprep.subr.bf16.mxu1 %v689_v0 }
  0x5b   :  { %535 = vmatpush3.bf16.msra.mxu0 %v534_v38 }
  0x5c   :  { %536 = vmatprep.subr.bf16.mxu0 %v689_v0 }
  0x5d   :  { %517 = vmatpush3.bf16.msra.mxu1 %v516_v20 }
  0x5e   :  { %518 = vmatprep.subr.bf16.mxu1 %v689_v0 }
  0x5f   :  { %538 = vmatpush3.bf16.msra.mxu0 %v537_v41 }
  0x60   :  { %539 = vmatprep.subr.bf16.mxu0 %v689_v0 }
  0x61   :  { %520 = vmatpush3.bf16.msra.mxu1 %v519_v23 }
  0x62   :  { %521 = vmatprep.subr.bf16.mxu1 %v689_v0 }
  0x63   :  { %541 = vmatpush3.bf16.msra.mxu0 %v540_v44 }
  0x64   :  { %542 = vmatprep.subr.bf16.mxu0 %v689_v0 }
  0x65   :  { %523 = vmatpush3.bf16.msra.mxu1 %v522_v26 }
  0x66   :  { %524 = vmatprep.subr.bf16.mxu1 %v689_v0 }
  0x67   :  { %544 = vmatpush3.bf16.msra.mxu0 %v543_v47 }
  0x68   :  { %545 = vmatprep.subr.bf16.mxu0 %v689_v0 }
  0x69   :  { %526 = vmatpush3.bf16.msra.mxu1 %v525_v29 }
  0x6b   :  { %547 = vmatpush3.bf16.msra.mxu0 %v546_v50 }
  0x6c   :  { %548 = vmatprep.subr.bf16.mxu0 %v689_v0  ;;  %v385_v0 = vld [vmem:[%s837_s6] ss:$0 sm:$0xff]  ;;  %s653_s6 = scalar_lea.vmem %s372_s28, 128 }
  0x6d   :  { %p654_p4 = scmp.ne.s32.totalorder %s372_s28, %s653_s6  ;;  %p659_p6 = scmp.lt.s32.totalorder %s653_s6, %s653_s6 }
  0x6f   :  { %550 = vmatpush3.bf16.msra.mxu0 %v549_v58  ;;  %p660_p7 = por %p659_p6, %p658_p5 }
  0x71   :  { %p661_p8 = pnand %p660_p7, %p654_p4 }
 0x123   :  { %v160_v52 = vpop.f32.mrb[0].mxu0 }
 0x124   :  { %v161_v53 = vadd.f32 %v382_v51, %v160_v52  ;;  %v429_v54 = vpop.f32.mrb[1].mxu0 }
 0x126   :  { %v164_v55 = vmax.f32 %v161_v53, 0.0 }
 0x128   :  { %463 = vmatmul.mubr.f32.vlgmr.msra.gmra.mrb[0].mxu1 %v164_v55 }
 0x1fb   :  { %v254_v60 = vpop.f32.mrb[0].mxu1 }
 0x1fc   :  { %v255_v61 = vadd.f32 %v384_v59, %v254_v60  ;;  %v464_v62 = vpop.f32.mrb[1].mxu1 }
 0x1fe   :  { %v258_v63 = vmax.f32 %v255_v61, 0.0 }
 0x200   :  { %498 = vmatmul.mubr.f32.vlgmr.msra.gmra.mrb[2].mxu0 %v258_v63 }
 0x2d3   :  { %v348_v1 = vpop.f32.mrb[2].mxu0 }
 0x2d4   :  { %v349_v2 = vadd.f32 %v385_v0, %v348_v1  ;;  %v499_v3 = vpop.f32.mrb[3].mxu0 }
 0x2d6   :  { %352 = vmax.xlane.f32.xlu0 %v349_v2 }
 0x363   :  { %v353_v4 = vpop.xlane.xlu0 %352 }
 0x364   :  { %v354_v5 = vsub.f32 %v349_v2, %v353_v4 }
 0x366   :  { %v355_v6 = vmul.f32 1.442695, %v354_v5 }
 0x368   :  { %561 = vpow2.f32 %v355_v6 }
 0x372   :  { %v562_v7 = vpop.eup %561 }
 0x373   :  { %357 = vadd.xlane.f32.xlu0 %v562_v7 }
 0x400   :  { %v358_v8 = vpop.xlane.xlu0 %357 }
 0x401   :  { %563 = vrcp.f32 %v358_v8 }
 0x40b   :  { %v564_v9 = vpop.eup %563 }
 0x40c   :  { %v360_v10 = vmul.f32 %v564_v9, %v358_v8 }
 0x40e   :  { %v361_v11 = vsub.f32 2.0, %v360_v10 }
 0x410   :  { %v362_v12 = vmul.f32 %v564_v9, %v361_v11 }
 0x412   :  { %v363_v13 = vmul.f32 %v562_v7, %v362_v12 }
 0x414   :  { %364 = vst [vmem:[#allocation10] sm:$0xff] %v363_v13 }
 0x415   :  { %664 = shalt.err (!%p661_p8)
}
 0x416   :  { %s665_s8 = scalar_lea.hbm %s838_s7, 128 }
 0x417   :  { %p666_p9 = scmp.ne.s32.totalorder %s838_s7, %s665_s8  ;;  %p669_p10 = scmp.lt.u32.totalorder %s665_s8, %s838_s7 }
 0x419   :  { %p671_p11 = pnand %p669_p10, %p666_p9 }
 0x41b   :  { %674 = shalt.err (!%p671_p11)
}
 0x41c   :  { %374 = dma.vmem_to_hbm [thread:$0]  %s372_s28, 128, %s838_s7, [#allocation4]  }
 0x41d   :  { %681 = dma.done.wait [#allocation4], 128  }
 0x41e   :  { %682 = vsyncadd [#allocation4], 4294967168 }
 0x41f   :  { %378 = vsyncpa [#allocation3], 1 }
 0x420   :  { %379 = vsyncpa [#allocation6], 1 }
 0x421   :  { %380 = vsyncpa [#allocation9], 1 }
 0x422   :  { %381 = vsyncpa [#allocation4], 1 }

</bundles_post_ra>
